<compile_context>
chip_gen: v5e
topology: v5e:2x2
jax: 0.10.0
libtpu: 0.0.40
codegen_flags: <defaults>
</compile_context>

<pallas_src>
import jax
import jax.numpy as jnp
from jax.experimental import pallas as pl
from jax.experimental.pallas import tpu as pltpu

LANES = 128
SUBLANES = 8
ALIGN = LANES * SUBLANES          # 1024-element (8,128) tile
PALLAS_MIN_ELEMENTS = 1 << 16     # below this, plain XLA wins (fusion, no call overhead)


def _tile_rows_for_device():
    """Per-generation block height.

    v5e's scoped-VMEM default is 16 MiB, so keep 2 MiB blocks (~8 MiB with
    input+output double-buffered). On v6e/v7x use 4 MiB blocks (~16 MiB
    double-buffered): at their HBM bandwidth the ~0.35 us/step grid overhead
    is a noticeable fraction of a 2 MiB tile's DMA time.
    """
    try:
        kind = jax.devices()[0].device_kind.lower()
    except Exception:
        kind = ""
    if any(g in kind for g in ("v2", "v3", "v4", "v5")):
        return 4096               # 4096 x 128 f32 = 2 MiB
    return 8192                   # 8192 x 128 f32 = 4 MiB


def _affine_relu_kernel(w_ref, b_ref, x_ref, o_ref):
    # quant -> conv1x1(1->1) -> relu -> dequant  ==  relu(w*x + b)
    # This kernel is HBM/DMA-bound: VALU/EUP slots have huge slack, so any
    # adjacent elementwise work (scale+clamp, dtype cast, residual add) should
    # be fused *here* instead of becoming another 8 B/elt HBM pass outside.
    w = w_ref[0]
    b = b_ref[0]
    o_ref[...] = jnp.maximum(x_ref[...] * w + b, jnp.float32(0.0))


def mymodel01_forward(x, weight, bias, *, donate_input=False):
    """MyModel01 forward. x: (N, 1, H, W), weight: (1,1,1,1), bias: (1,)."""
    orig_shape = x.shape
    assert x.shape[1] == 1, "Conv2d(1, 1, 1) expects a single input channel"
    x = x.astype(jnp.float32)

    w0 = weight.reshape(()).astype(jnp.float32)
    b0 = bias.reshape(()).astype(jnp.float32)

    n = x.size
    # Tiny inputs: custom-call boundary + pipeline prologue dwarf the work; let
    # XLA fuse the elementwise affine+ReLU instead.
    if n < PALLAS_MIN_ELEMENTS:
        return jnp.maximum(x * w0 + b0, 0.0)

    w_scalar = w0.reshape(1)
    b_scalar = b0.reshape(1)

    # Lane-dense 2D view: flatten NCHW -> (rows, 128). Pad only to a (8,128)
    # tile multiple (<= 1023 elements); in the common aligned case there is no
    # pad and no output slice at all.
    flat = x.reshape(-1)
    padded_n = pl.cdiv(n, ALIGN) * ALIGN
    if padded_n != n:
        flat = jnp.pad(flat, (0, padded_n - n))
    rows = padded_n // LANES                  # multiple of 8
    x2d = flat.reshape(rows, LANES)

    tile_rows = _tile_rows_for_device()
    block_rows = min(rows, tile_rows)         # multiple of 8 either way
    # Ragged final block is fine for this elementwise op: OOB output rows are
    # dropped by Pallas, so we never pad the input up to a block multiple.
    grid = (pl.cdiv(rows, block_rows),)

    out2d = pl.pallas_call(
        _affine_relu_kernel,
        out_shape=jax.ShapeDtypeStruct((rows, LANES), jnp.float32),
        grid=grid,
        in_specs=[
            pl.BlockSpec(memory_space=pltpu.SMEM),                # weight scalar
            pl.BlockSpec(memory_space=pltpu.SMEM),                # bias scalar
            pl.BlockSpec((block_rows, LANES), lambda i: (i, 0)),  # x tile
        ],
        out_specs=pl.BlockSpec((block_rows, LANES), lambda i: (i, 0)),
        # Optional: alias x2d into the output to halve the HBM footprint for
        # very large activations (bytes moved are unchanged).
        input_output_aliases=({2: 0} if donate_input else {}),
        compiler_params=pltpu.CompilerParams(
            # TODO(synk): on v7x, verify in a trace that both TensorCores are
            # engaged; if not, switch this axis to pltpu.CORE_PARALLEL.
            dimension_semantics=("parallel",),
            vmem_limit_bytes=32 << 20,
        ),
        cost_estimate=pl.CostEstimate(
            flops=2 * padded_n, transcendentals=0, bytes_accessed=8 * padded_n),
    )(w_scalar, b_scalar, x2d)

    out = out2d.reshape(-1)
    if padded_n != n:
        out = out[:n]
    return out.reshape(orig_shape)


if __name__ == "__main__":
    key = jax.random.PRNGKey(0)
    kx1, kx2, kx3, kx4, kw, kb = jax.random.split(key, 6)

    # Conv2d(1,1,1): weight (1,1,1,1), bias (1,).
    weight = jax.random.uniform(kw, (1, 1, 1, 1), dtype=jnp.float32,
                                minval=-1.0, maxval=1.0)
    bias = jax.random.uniform(kb, (1,), dtype=jnp.float32,
                              minval=-1.0, maxval=1.0)

    def ref_fn(x):
        return jnp.maximum(x * weight.reshape(()) + bias.reshape(()), 0.0)

    def check(x):
        out = mymodel01_forward(x, weight, bias)
        jax.block_until_ready(out)
        assert out.shape == x.shape and out.dtype == jnp.float32
        assert jnp.allclose(out, ref_fn(x), atol=1e-6), f"mismatch at {x.shape}"

    # 1) Model's literal small shape (2,1,16,16): tiny-input XLA bypass path.
    check(jax.random.normal(kx1, (2, 1, 16, 16), dtype=jnp.float32))

    # 2) Smallest Pallas-path shape: single full block, aligned, no pad/slice.
    check(jax.random.normal(kx2, (2, 1, 256, 128), dtype=jnp.float32))

    # 3) Multi-block grid with a ragged final block (rows=8200 on both 4096
    #    and 8192 tiles), aligned so there is no pad and no output slice.
    check(jax.random.normal(kx3, (1, 1, 1025, 1024), dtype=jnp.float32))

    # 4) Non-1024-aligned element count: exercises the <=1023-element tail pad
    #    and output slice path.
    check(jax.random.normal(kx4, (2, 1, 300, 257), dtype=jnp.float32))

    print("KERNEL_OK")
</pallas_src>

<mosaic_0001>
module attributes {stable_mosaic.version = 11 : i64} {
  func.func @_affine_relu_kernel(%arg0: i32, %arg1: memref<1xf32, #tpu.memory_space<smem>>, %arg2: memref<1xf32, #tpu.memory_space<smem>>, %arg3: memref<512x128xf32, #tpu.memory_space<vmem>>, %arg4: memref<512x128xf32, #tpu.memory_space<vmem>>) attributes {dimension_semantics = [#tpu.dimension_semantics<parallel>], iteration_bounds = array<i64: 1>, scalar_prefetch = 0 : i64, scratch_operands = 0 : i64, tpu.core_type = #tpu.core_type<tc>, window_params = [{transform_indices = @transform_0, window_bounds = array<i64: 1>}, {transform_indices = @transform_1, window_bounds = array<i64: 1>}, {transform_indices = @transform_2, window_bounds = array<i64: 512, 128>}, {transform_indices = @transform_3, window_bounds = array<i64: 512, 128>}]} {
    %c0 = arith.constant 0 : index
    %0 = memref.load %arg1[%c0] : memref<1xf32, #tpu.memory_space<smem>>
    %c0_0 = arith.constant 0 : index
    %1 = memref.load %arg2[%c0_0] : memref<1xf32, #tpu.memory_space<smem>>
    %c0_1 = arith.constant 0 : index
    %c0_2 = arith.constant 0 : index
    %2 = vector.load %arg3[%c0_1, %c0_2] : memref<512x128xf32, #tpu.memory_space<vmem>>, vector<512x128xf32>
    %3 = vector.broadcast %0 : f32 to vector<512x128xf32>
    %4 = arith.mulf %2, %3 : vector<512x128xf32>
    %5 = vector.broadcast %1 : f32 to vector<512x128xf32>
    %6 = arith.addf %4, %5 : vector<512x128xf32>
    %cst = arith.constant 0.000000e+00 : f32
    %7 = vector.broadcast %cst : f32 to vector<512x128xf32>
    %8 = arith.maximumf %6, %7 : vector<512x128xf32>
    %c0_3 = arith.constant 0 : index
    %c0_4 = arith.constant 0 : index
    %9 = vector.load %arg4[%c0_3, %c0_4] : memref<512x128xf32, #tpu.memory_space<vmem>>, vector<512x128xf32>
    tpu.vector_store %arg4[%c0_3, %c0_4], %8 {strides = array<i32>} : memref<512x128xf32, #tpu.memory_space<vmem>>, vector<512x128xf32>,
    return
  }
  func.func @transform_0(%arg0: i32) -> i32 {
    %c0_i32 = arith.constant 0 : i32
    %c0_i32_0 = arith.constant 0 : i32
    return %c0_i32 : i32
  }
  func.func @transform_1(%arg0: i32) -> i32 {
    %c0_i32 = arith.constant 0 : i32
    %c0_i32_0 = arith.constant 0 : i32
    return %c0_i32 : i32
  }
  func.func @transform_2(%arg0: i32) -> (i32, i32) {
    %c0_i32 = arith.constant 0 : i32
    %c0_i32_0 = arith.constant 0 : i32
    return %arg0, %c0_i32 : i32, i32
  }
  func.func @transform_3(%arg0: i32) -> (i32, i32) {
    %c0_i32 = arith.constant 0 : i32
    %c0_i32_0 = arith.constant 0 : i32
    return %arg0, %c0_i32 : i32, i32
  }
}

</mosaic_0001>

<bundles_post_ra>
// kernel: tpu_custom_call.1
= control target key start
LH: loop header
LB: loop body
LE: loop exit
PB: predicated region body
PF: predicated region fallthrough
CT: control target
= control target key end

     0   :  { %10 = vsyncpa [#allocation5], 0  ;;  %s606_s0 = inlined_call_operand.<no memory space> [shape: f32[1], index: 0, kind: input, shape index: {}]   ;;  %s607_s1 = inlined_call_operand.<no memory space> [shape: f32[1], index: 1, kind: input, shape index: {}]   ;;  %s608_s2 = inlined_call_operand.hbm [shape: f32[512,128], index: 2, kind: input, shape index: {}]   ;;  %s609_s3 = inlined_call_operand.hbm [shape: f32[512,128], index: 3, kind: output, shape index: {}]  }
   0x1   :  { %11 = vsyncpa [#allocation6], 0  ;;  %s20_s14 = sshll.u32 %s608_s2, 4  ;;  %s432_s15 = smov [#allocation4]   ;;  %s21_s14 = int_to_ptr.hbm [resolvable:$true] %s20_s14 }
   0x2   :  { %s22_s16 = sshll.u32 %s432_s15, 4  ;;  %s433_s17 = smov 128   ;;  %s23_s16 = int_to_ptr.vmem [resolvable:$true] %s22_s16 }
   0x3   :  { %s434_s18 = smov 8  }
   0x4   :  { %28 = dma.hbm_to_vmem [thread:$0]  %s21_s14, 8192, %s23_s16, [#allocation5], %s433_s17, %s433_s17, %s434_s18  }
   0x5   :  { %428 = dma.done.wait [#allocation5], 8192  }
   0x6   :  { %429 = vsyncadd [#allocation5], 4294959104  ;;  %v465_v0 = vstv %s606_s0  ;;  %v35_v1 = vld [vmem:[#allocation4] sm:$0xff]  ;;  %v470_v2 = vstv %s607_s1  ;;  %v36_v3 = vld [vmem:[#allocation4 + $0x8] sm:$0xff]  ;;  %s435_s0 = smov [#allocation7]   ;;  %s363_s24 = sshll.u32 %s609_s3, 4  ;;  %s364_s24 = int_to_ptr.hbm [resolvable:$true] %s363_s24 }
   0x7   :  { %v37_v4 = vld [vmem:[#allocation4 + $0x10] sm:$0xff]  ;;  %v100_v5 = vmul.f32 %v465_v0, %v35_v1  ;;  %v101_v6 = vmul.f32 %v465_v0, %v36_v3  ;;  %v38_v8 = vld [vmem:[#allocation4 + $0x18] sm:$0xff]  ;;  %v39_v9 = vld [vmem:[#allocation4 + $0x20] sm:$0xff]  ;;  %s361_s1 = sshll.u32 %s435_s0, 4  ;;  %s362_s1 = int_to_ptr.vmem [resolvable:$true] %s361_s1 }
   0x8   :  { %v102_v7 = vmul.f32 %v465_v0, %v37_v4  ;;  %v40_v10 = vld [vmem:[#allocation4 + $0x28] sm:$0xff]  ;;  %v103_v11 = vmul.f32 %v465_v0, %v38_v8  ;;  %v104_v12 = vmul.f32 %v465_v0, %v39_v9  ;;  %v41_v14 = vld [vmem:[#allocation4 + $0x30] sm:$0xff]  ;;  %v42_v15 = vld [vmem:[#allocation4 + $0x38] sm:$0xff] }
   0x9   :  { %v105_v13 = vmul.f32 %v465_v0, %v40_v10  ;;  %v165_v16 = vadd.f32 %v470_v2, %v100_v5  ;;  %v166_v17 = vadd.f32 %v470_v2, %v101_v6  ;;  %v106_v19 = vmul.f32 %v465_v0, %v41_v14  ;;  %v43_v24 = vld [vmem:[#allocation4 + $0x40] sm:$0xff]  ;;  %v44_v25 = vld [vmem:[#allocation4 + $0x48] sm:$0xff]  ;;  %v45_v26 = vld [vmem:[#allocation4 + $0x50] sm:$0xff] }
   0xa   :  { %v167_v18 = vadd.f32 %v470_v2, %v102_v7  ;;  %v168_v20 = vadd.f32 %v470_v2, %v103_v11  ;;  %v169_v21 = vadd.f32 %v470_v2, %v104_v12  ;;  %v107_v23 = vmul.f32 %v465_v0, %v42_v15  ;;  %v46_v31 = vld [vmem:[#allocation4 + $0x58] sm:$0xff]  ;;  %v47_v32 = vld [vmem:[#allocation4 + $0x60] sm:$0xff]  ;;  %v48_v33 = vld [vmem:[#allocation4 + $0x68] sm:$0xff] }
   0xb   :  { %v170_v22 = vadd.f32 %v470_v2, %v105_v13  ;;  %v229_v27 = vmax.f32 %v165_v16, 0.0  ;;  %v230_v28 = vmax.f32 %v166_v17, 0.0  ;;  %v171_v30 = vadd.f32 %v470_v2, %v106_v19  ;;  %v49_v37 = vld [vmem:[#allocation4 + $0x70] sm:$0xff]  ;;  %v50_v42 = vld [vmem:[#allocation4 + $0x78] sm:$0xff]  ;;  %v51_v54 = vld [vmem:[#allocation4 + $0x80] sm:$0xff] }
   0xc   :  { %v231_v29 = vmax.f32 %v167_v18, 0.0  ;;  %v232_v34 = vmax.f32 %v168_v20, 0.0  ;;  %v233_v35 = vmax.f32 %v169_v21, 0.0  ;;  %v172_v36 = vadd.f32 %v470_v2, %v107_v23  ;;  %v52_v55 = vld [vmem:[#allocation4 + $0x88] sm:$0xff]  ;;  %v53_v56 = vld [vmem:[#allocation4 + $0x90] sm:$0xff]  ;;  %v54_v59 = vld [vmem:[#allocation4 + $0x98] sm:$0xff] }
   0xd   :  { %293 = vst [vmem:[#allocation7] sm:$0xff] %v229_v27  ;;  %v234_v38 = vmax.f32 %v170_v22, 0.0  ;;  %v108_v39 = vmul.f32 %v465_v0, %v43_v24  ;;  %v109_v40 = vmul.f32 %v465_v0, %v44_v25  ;;  %v110_v41 = vmul.f32 %v465_v0, %v45_v26  ;;  %v55_v63 = vld [vmem:[#allocation4 + $0xa0] sm:$0xff]  ;;  %v56_v6 = vld [vmem:[#allocation4 + $0xa8] sm:$0xff]  ;;  %v57_v10 = vld [vmem:[#allocation4 + $0xb0] sm:$0xff] }
   0xe   :  { %294 = vst [vmem:[#allocation7 + $0x8] sm:$0xff] %v230_v28  ;;  %v235_v43 = vmax.f32 %v171_v30, 0.0  ;;  %v111_v44 = vmul.f32 %v465_v0, %v46_v31  ;;  %v112_v45 = vmul.f32 %v465_v0, %v47_v32  ;;  %v113_v46 = vmul.f32 %v465_v0, %v48_v33  ;;  %v58_v14 = vld [vmem:[#allocation4 + $0xb8] sm:$0xff]  ;;  %v59_v18 = vld [vmem:[#allocation4 + $0xc0] sm:$0xff]  ;;  %v60_v22 = vld [vmem:[#allocation4 + $0xc8] sm:$0xff] }
   0xf   :  { %295 = vst [vmem:[#allocation7 + $0x10] sm:$0xff] %v231_v29  ;;  %v173_v47 = vadd.f32 %v470_v2, %v108_v39  ;;  %v174_v48 = vadd.f32 %v470_v2, %v109_v40  ;;  %v175_v49 = vadd.f32 %v470_v2, %v110_v41  ;;  %v114_v50 = vmul.f32 %v465_v0, %v49_v37  ;;  %v61_v26 = vld [vmem:[#allocation4 + $0xd0] sm:$0xff]  ;;  %v62_v30 = vld [vmem:[#allocation4 + $0xd8] sm:$0xff] }
  0x10   :  { %296 = vst [vmem:[#allocation7 + $0x18] sm:$0xff] %v232_v34  ;;  %v236_v51 = vmax.f32 %v172_v36, 0.0  ;;  %v176_v52 = vadd.f32 %v470_v2, %v111_v44  ;;  %v115_v53 = vmul.f32 %v465_v0, %v50_v42  ;;  %v177_v58 = vadd.f32 %v470_v2, %v112_v45  ;;  %v63_v34 = vld [vmem:[#allocation4 + $0xe0] sm:$0xff]  ;;  %v65_v42 = vld [vmem:[#allocation4 + $0xf0] sm:$0xff] }
  0x11   :  { %297 = vst [vmem:[#allocation7 + $0x20] sm:$0xff] %v233_v35  ;;  %v237_v57 = vmax.f32 %v173_v47, 0.0  ;;  %v238_v60 = vmax.f32 %v174_v48, 0.0  ;;  %v239_v61 = vmax.f32 %v175_v49, 0.0  ;;  %v178_v62 = vadd.f32 %v470_v2, %v113_v46  ;;  %v66_v46 = vld [vmem:[#allocation4 + $0xf8] sm:$0xff] }
  0x12   :  { %298 = vst [vmem:[#allocation7 + $0x28] sm:$0xff] %v234_v38  ;;  %v179_v1 = vadd.f32 %v470_v2, %v114_v50  ;;  %v116_v3 = vmul.f32 %v465_v0, %v51_v54  ;;  %v117_v4 = vmul.f32 %v465_v0, %v52_v55  ;;  %v118_v5 = vmul.f32 %v465_v0, %v53_v56  ;;  %v64_v38 = vld [vmem:[#allocation4 + $0xe8] sm:$0xff]  ;;  %v67_v50 = vld [vmem:[#allocation4 + $0x100] sm:$0xff] }
  0x13   :  { %299 = vst [vmem:[#allocation7 + $0x30] sm:$0xff] %v235_v43  ;;  %v240_v7 = vmax.f32 %v176_v52, 0.0  ;;  %v180_v8 = vadd.f32 %v470_v2, %v115_v53  ;;  %v119_v9 = vmul.f32 %v465_v0, %v54_v59  ;;  %v241_v11 = vmax.f32 %v177_v58, 0.0  ;;  %v68_v54 = vld [vmem:[#allocation4 + $0x108] sm:$0xff]  ;;  %v69_v58 = vld [vmem:[#allocation4 + $0x110] sm:$0xff] }
  0x14   :  { %300 = vst [vmem:[#allocation7 + $0x38] sm:$0xff] %v236_v51  ;;  %v181_v12 = vadd.f32 %v470_v2, %v116_v3  ;;  %v120_v13 = vmul.f32 %v465_v0, %v55_v63  ;;  %v242_v15 = vmax.f32 %v178_v62, 0.0  ;;  %v182_v16 = vadd.f32 %v470_v2, %v117_v4  ;;  %v70_v62 = vld [vmem:[#allocation4 + $0x118] sm:$0xff]  ;;  %v71_v4 = vld [vmem:[#allocation4 + $0x120] sm:$0xff] }
  0x15   :  { %301 = vst [vmem:[#allocation7 + $0x40] sm:$0xff] %v237_v57  ;;  %v121_v17 = vmul.f32 %v465_v0, %v56_v6  ;;  %v243_v19 = vmax.f32 %v179_v1, 0.0  ;;  %v183_v20 = vadd.f32 %v470_v2, %v118_v5  ;;  %v122_v21 = vmul.f32 %v465_v0, %v57_v10 }
  0x16   :  { %302 = vst [vmem:[#allocation7 + $0x48] sm:$0xff] %v238_v60  ;;  %v244_v23 = vmax.f32 %v180_v8, 0.0  ;;  %v184_v24 = vadd.f32 %v470_v2, %v119_v9  ;;  %v123_v25 = vmul.f32 %v465_v0, %v58_v14  ;;  %v245_v27 = vmax.f32 %v181_v12, 0.0  ;;  %v72_v8 = vld [vmem:[#allocation4 + $0x128] sm:$0xff]  ;;  %v73_v12 = vld [vmem:[#allocation4 + $0x130] sm:$0xff] }
  0x17   :  { %303 = vst [vmem:[#allocation7 + $0x50] sm:$0xff] %v239_v61  ;;  %v185_v28 = vadd.f32 %v470_v2, %v120_v13  ;;  %v124_v29 = vmul.f32 %v465_v0, %v59_v18  ;;  %v246_v31 = vmax.f32 %v182_v16, 0.0  ;;  %v186_v32 = vadd.f32 %v470_v2, %v121_v17  ;;  %v74_v16 = vld [vmem:[#allocation4 + $0x138] sm:$0xff] }
  0x18   :  { %304 = vst [vmem:[#allocation7 + $0x58] sm:$0xff] %v240_v7  ;;  %v125_v33 = vmul.f32 %v465_v0, %v60_v22  ;;  %v247_v35 = vmax.f32 %v183_v20, 0.0  ;;  %v187_v36 = vadd.f32 %v470_v2, %v122_v21  ;;  %v126_v37 = vmul.f32 %v465_v0, %v61_v26  ;;  %v75_v20 = vld [vmem:[#allocation4 + $0x140] sm:$0xff] }
  0x19   :  { %305 = vst [vmem:[#allocation7 + $0x60] sm:$0xff] %v241_v11  ;;  %v248_v39 = vmax.f32 %v184_v24, 0.0  ;;  %v188_v40 = vadd.f32 %v470_v2, %v123_v25  ;;  %v127_v41 = vmul.f32 %v465_v0, %v62_v30  ;;  %v249_v43 = vmax.f32 %v185_v28, 0.0  ;;  %v76_v24 = vld [vmem:[#allocation4 + $0x148] sm:$0xff]  ;;  %v77_v28 = vld [vmem:[#allocation4 + $0x150] sm:$0xff] }
  0x1a   :  { %306 = vst [vmem:[#allocation7 + $0x68] sm:$0xff] %v242_v15  ;;  %v189_v44 = vadd.f32 %v470_v2, %v124_v29  ;;  %v128_v45 = vmul.f32 %v465_v0, %v63_v34  ;;  %v250_v47 = vmax.f32 %v186_v32, 0.0  ;;  %v190_v48 = vadd.f32 %v470_v2, %v125_v33  ;;  %v78_v32 = vld [vmem:[#allocation4 + $0x158] sm:$0xff] }
  0x1b   :  { %307 = vst [vmem:[#allocation7 + $0x70] sm:$0xff] %v243_v19  ;;  %v129_v49 = vmul.f32 %v465_v0, %v64_v38  ;;  %v251_v51 = vmax.f32 %v187_v36, 0.0  ;;  %v191_v52 = vadd.f32 %v470_v2, %v126_v37  ;;  %v130_v53 = vmul.f32 %v465_v0, %v65_v42  ;;  %v79_v36 = vld [vmem:[#allocation4 + $0x160] sm:$0xff] }
  0x1c   :  { %308 = vst [vmem:[#allocation7 + $0x78] sm:$0xff] %v244_v23  ;;  %v252_v55 = vmax.f32 %v188_v40, 0.0  ;;  %v192_v56 = vadd.f32 %v470_v2, %v127_v41  ;;  %v131_v57 = vmul.f32 %v465_v0, %v66_v46  ;;  %v253_v59 = vmax.f32 %v189_v44, 0.0  ;;  %v80_v40 = vld [vmem:[#allocation4 + $0x168] sm:$0xff]  ;;  %v81_v44 = vld [vmem:[#allocation4 + $0x170] sm:$0xff] }
  0x1d   :  { %309 = vst [vmem:[#allocation7 + $0x80] sm:$0xff] %v245_v27  ;;  %v193_v60 = vadd.f32 %v470_v2, %v128_v45  ;;  %v132_v61 = vmul.f32 %v465_v0, %v67_v50  ;;  %v254_v63 = vmax.f32 %v190_v48, 0.0  ;;  %v194_v1 = vadd.f32 %v470_v2, %v129_v49  ;;  %v82_v48 = vld [vmem:[#allocation4 + $0x178] sm:$0xff] }
  0x1e   :  { %310 = vst [vmem:[#allocation7 + $0x88] sm:$0xff] %v246_v31  ;;  %v133_v3 = vmul.f32 %v465_v0, %v68_v54  ;;  %v255_v5 = vmax.f32 %v191_v52, 0.0  ;;  %v195_v6 = vadd.f32 %v470_v2, %v130_v53  ;;  %v134_v7 = vmul.f32 %v465_v0, %v69_v58  ;;  %v83_v52 = vld [vmem:[#allocation4 + $0x180] sm:$0xff] }
  0x1f   :  { %311 = vst [vmem:[#allocation7 + $0x90] sm:$0xff] %v247_v35  ;;  %v256_v9 = vmax.f32 %v192_v56, 0.0  ;;  %v196_v10 = vadd.f32 %v470_v2, %v131_v57  ;;  %v135_v11 = vmul.f32 %v465_v0, %v70_v62  ;;  %v257_v13 = vmax.f32 %v193_v60, 0.0  ;;  %v84_v56 = vld [vmem:[#allocation4 + $0x188] sm:$0xff]  ;;  %v85_v60 = vld [vmem:[#allocation4 + $0x190] sm:$0xff] }
  0x20   :  { %312 = vst [vmem:[#allocation7 + $0x98] sm:$0xff] %v248_v39  ;;  %v197_v14 = vadd.f32 %v470_v2, %v132_v61  ;;  %v136_v15 = vmul.f32 %v465_v0, %v71_v4  ;;  %v258_v17 = vmax.f32 %v194_v1, 0.0  ;;  %v198_v18 = vadd.f32 %v470_v2, %v133_v3  ;;  %v86_v1 = vld [vmem:[#allocation4 + $0x198] sm:$0xff] }
  0x21   :  { %313 = vst [vmem:[#allocation7 + $0xa0] sm:$0xff] %v249_v43  ;;  %v137_v19 = vmul.f32 %v465_v0, %v72_v8  ;;  %v259_v21 = vmax.f32 %v195_v6, 0.0  ;;  %v199_v22 = vadd.f32 %v470_v2, %v134_v7  ;;  %v138_v23 = vmul.f32 %v465_v0, %v73_v12  ;;  %v87_v6 = vld [vmem:[#allocation4 + $0x1a0] sm:$0xff] }
  0x22   :  { %314 = vst [vmem:[#allocation7 + $0xa8] sm:$0xff] %v250_v47  ;;  %v260_v25 = vmax.f32 %v196_v10, 0.0  ;;  %v200_v26 = vadd.f32 %v470_v2, %v135_v11  ;;  %v139_v27 = vmul.f32 %v465_v0, %v74_v16  ;;  %v261_v29 = vmax.f32 %v197_v14, 0.0  ;;  %v88_v10 = vld [vmem:[#allocation4 + $0x1a8] sm:$0xff]  ;;  %v89_v14 = vld [vmem:[#allocation4 + $0x1b0] sm:$0xff] }
  0x23   :  { %315 = vst [vmem:[#allocation7 + $0xb0] sm:$0xff] %v251_v51  ;;  %v201_v30 = vadd.f32 %v470_v2, %v136_v15  ;;  %v140_v31 = vmul.f32 %v465_v0, %v75_v20  ;;  %v262_v33 = vmax.f32 %v198_v18, 0.0  ;;  %v202_v34 = vadd.f32 %v470_v2, %v137_v19  ;;  %v90_v18 = vld [vmem:[#allocation4 + $0x1b8] sm:$0xff] }
  0x24   :  { %316 = vst [vmem:[#allocation7 + $0xb8] sm:$0xff] %v252_v55  ;;  %v141_v35 = vmul.f32 %v465_v0, %v76_v24  ;;  %v263_v37 = vmax.f32 %v199_v22, 0.0  ;;  %v203_v38 = vadd.f32 %v470_v2, %v138_v23  ;;  %v142_v39 = vmul.f32 %v465_v0, %v77_v28  ;;  %v91_v22 = vld [vmem:[#allocation4 + $0x1c0] sm:$0xff] }
  0x25   :  { %317 = vst [vmem:[#allocation7 + $0xc0] sm:$0xff] %v253_v59  ;;  %v264_v41 = vmax.f32 %v200_v26, 0.0  ;;  %v204_v42 = vadd.f32 %v470_v2, %v139_v27  ;;  %v143_v43 = vmul.f32 %v465_v0, %v78_v32  ;;  %v265_v45 = vmax.f32 %v201_v30, 0.0  ;;  %v92_v26 = vld [vmem:[#allocation4 + $0x1c8] sm:$0xff]  ;;  %v93_v30 = vld [vmem:[#allocation4 + $0x1d0] sm:$0xff] }
  0x26   :  { %318 = vst [vmem:[#allocation7 + $0xc8] sm:$0xff] %v254_v63  ;;  %v205_v46 = vadd.f32 %v470_v2, %v140_v31  ;;  %v144_v47 = vmul.f32 %v465_v0, %v79_v36  ;;  %v266_v49 = vmax.f32 %v202_v34, 0.0  ;;  %v206_v50 = vadd.f32 %v470_v2, %v141_v35  ;;  %v94_v34 = vld [vmem:[#allocation4 + $0x1d8] sm:$0xff] }
  0x27   :  { %319 = vst [vmem:[#allocation7 + $0xd0] sm:$0xff] %v255_v5  ;;  %v145_v51 = vmul.f32 %v465_v0, %v80_v40  ;;  %v267_v53 = vmax.f32 %v203_v38, 0.0  ;;  %v207_v54 = vadd.f32 %v470_v2, %v142_v39  ;;  %v146_v55 = vmul.f32 %v465_v0, %v81_v44  ;;  %v95_v38 = vld [vmem:[#allocation4 + $0x1e0] sm:$0xff] }
  0x28   :  { %320 = vst [vmem:[#allocation7 + $0xd8] sm:$0xff] %v256_v9  ;;  %v268_v57 = vmax.f32 %v204_v42, 0.0  ;;  %v208_v58 = vadd.f32 %v470_v2, %v143_v43  ;;  %v147_v59 = vmul.f32 %v465_v0, %v82_v48  ;;  %v269_v61 = vmax.f32 %v205_v46, 0.0  ;;  %v96_v42 = vld [vmem:[#allocation4 + $0x1e8] sm:$0xff]  ;;  %v97_v46 = vld [vmem:[#allocation4 + $0x1f0] sm:$0xff] }
  0x29   :  { %321 = vst [vmem:[#allocation7 + $0xe0] sm:$0xff] %v257_v13  ;;  %v209_v62 = vadd.f32 %v470_v2, %v144_v47  ;;  %v148_v63 = vmul.f32 %v465_v0, %v83_v52  ;;  %v270_v3 = vmax.f32 %v206_v50, 0.0  ;;  %v210_v4 = vadd.f32 %v470_v2, %v145_v51  ;;  %v98_v50 = vld [vmem:[#allocation4 + $0x1f8] sm:$0xff] }
  0x2a   :  { %322 = vst [vmem:[#allocation7 + $0xe8] sm:$0xff] %v258_v17  ;;  %v149_v5 = vmul.f32 %v465_v0, %v84_v56  ;;  %v271_v7 = vmax.f32 %v207_v54, 0.0  ;;  %v211_v8 = vadd.f32 %v470_v2, %v146_v55  ;;  %v150_v9 = vmul.f32 %v465_v0, %v85_v60 }
  0x2b   :  { %323 = vst [vmem:[#allocation7 + $0xf0] sm:$0xff] %v259_v21  ;;  %v272_v11 = vmax.f32 %v208_v58, 0.0  ;;  %v212_v12 = vadd.f32 %v470_v2, %v147_v59  ;;  %v151_v13 = vmul.f32 %v465_v0, %v86_v1  ;;  %v273_v15 = vmax.f32 %v209_v62, 0.0 }
  0x2c   :  { %324 = vst [vmem:[#allocation7 + $0xf8] sm:$0xff] %v260_v25  ;;  %v213_v16 = vadd.f32 %v470_v2, %v148_v63  ;;  %v152_v17 = vmul.f32 %v465_v0, %v87_v6  ;;  %v274_v19 = vmax.f32 %v210_v4, 0.0  ;;  %v214_v20 = vadd.f32 %v470_v2, %v149_v5 }
  0x2d   :  { %325 = vst [vmem:[#allocation7 + $0x100] sm:$0xff] %v261_v29  ;;  %v153_v21 = vmul.f32 %v465_v0, %v88_v10  ;;  %v275_v23 = vmax.f32 %v211_v8, 0.0  ;;  %v215_v24 = vadd.f32 %v470_v2, %v150_v9  ;;  %v154_v25 = vmul.f32 %v465_v0, %v89_v14 }
  0x2e   :  { %326 = vst [vmem:[#allocation7 + $0x108] sm:$0xff] %v262_v33  ;;  %v276_v27 = vmax.f32 %v212_v12, 0.0  ;;  %v216_v28 = vadd.f32 %v470_v2, %v151_v13  ;;  %v155_v29 = vmul.f32 %v465_v0, %v90_v18  ;;  %v277_v31 = vmax.f32 %v213_v16, 0.0 }
  0x2f   :  { %327 = vst [vmem:[#allocation7 + $0x110] sm:$0xff] %v263_v37  ;;  %v217_v32 = vadd.f32 %v470_v2, %v152_v17  ;;  %v156_v33 = vmul.f32 %v465_v0, %v91_v22  ;;  %v278_v35 = vmax.f32 %v214_v20, 0.0  ;;  %v218_v36 = vadd.f32 %v470_v2, %v153_v21 }
  0x30   :  { %328 = vst [vmem:[#allocation7 + $0x118] sm:$0xff] %v264_v41  ;;  %v157_v37 = vmul.f32 %v465_v0, %v92_v26  ;;  %v279_v39 = vmax.f32 %v215_v24, 0.0  ;;  %v219_v40 = vadd.f32 %v470_v2, %v154_v25  ;;  %v158_v41 = vmul.f32 %v465_v0, %v93_v30 }
  0x31   :  { %329 = vst [vmem:[#allocation7 + $0x120] sm:$0xff] %v265_v45  ;;  %v280_v43 = vmax.f32 %v216_v28, 0.0  ;;  %v220_v44 = vadd.f32 %v470_v2, %v155_v29  ;;  %v159_v45 = vmul.f32 %v465_v0, %v94_v34  ;;  %v281_v47 = vmax.f32 %v217_v32, 0.0 }
  0x32   :  { %330 = vst [vmem:[#allocation7 + $0x128] sm:$0xff] %v266_v49  ;;  %v221_v48 = vadd.f32 %v470_v2, %v156_v33  ;;  %v160_v49 = vmul.f32 %v465_v0, %v95_v38  ;;  %v282_v51 = vmax.f32 %v218_v36, 0.0  ;;  %v222_v52 = vadd.f32 %v470_v2, %v157_v37 }
  0x33   :  { %331 = vst [vmem:[#allocation7 + $0x130] sm:$0xff] %v267_v53  ;;  %v161_v53 = vmul.f32 %v465_v0, %v96_v42  ;;  %v283_v54 = vmax.f32 %v219_v40, 0.0  ;;  %v223_v55 = vadd.f32 %v470_v2, %v158_v41  ;;  %v162_v56 = vmul.f32 %v465_v0, %v97_v46 }
  0x34   :  { %332 = vst [vmem:[#allocation7 + $0x138] sm:$0xff] %v268_v57  ;;  %v284_v57 = vmax.f32 %v220_v44, 0.0  ;;  %v224_v58 = vadd.f32 %v470_v2, %v159_v45  ;;  %v163_v59 = vmul.f32 %v465_v0, %v98_v50  ;;  %v285_v60 = vmax.f32 %v221_v48, 0.0 }
  0x35   :  { %333 = vst [vmem:[#allocation7 + $0x140] sm:$0xff] %v269_v61  ;;  %v225_v61 = vadd.f32 %v470_v2, %v160_v49  ;;  %v286_v62 = vmax.f32 %v222_v52, 0.0  ;;  %v226_v63 = vadd.f32 %v470_v2, %v161_v53  ;;  %v287_v1 = vmax.f32 %v223_v55, 0.0 }
  0x36   :  { %334 = vst [vmem:[#allocation7 + $0x148] sm:$0xff] %v270_v3  ;;  %v227_v3 = vadd.f32 %v470_v2, %v162_v56  ;;  %v288_v4 = vmax.f32 %v224_v58, 0.0  ;;  %v228_v5 = vadd.f32 %v470_v2, %v163_v59 }
  0x37   :  { %335 = vst [vmem:[#allocation7 + $0x150] sm:$0xff] %v271_v7  ;;  %v289_v6 = vmax.f32 %v225_v61, 0.0  ;;  %v290_v0 = vmax.f32 %v226_v63, 0.0 }
  0x38   :  { %336 = vst [vmem:[#allocation7 + $0x158] sm:$0xff] %v272_v11  ;;  %v291_v7 = vmax.f32 %v227_v3, 0.0  ;;  %v292_v8 = vmax.f32 %v228_v5, 0.0 }
  0x39   :  { %337 = vst [vmem:[#allocation7 + $0x160] sm:$0xff] %v273_v15 }
  0x3a   :  { %338 = vst [vmem:[#allocation7 + $0x168] sm:$0xff] %v274_v19 }
  0x3b   :  { %339 = vst [vmem:[#allocation7 + $0x170] sm:$0xff] %v275_v23 }
  0x3c   :  { %340 = vst [vmem:[#allocation7 + $0x178] sm:$0xff] %v276_v27 }
  0x3d   :  { %341 = vst [vmem:[#allocation7 + $0x180] sm:$0xff] %v277_v31 }
  0x3e   :  { %342 = vst [vmem:[#allocation7 + $0x188] sm:$0xff] %v278_v35 }
  0x3f   :  { %343 = vst [vmem:[#allocation7 + $0x190] sm:$0xff] %v279_v39 }
  0x40   :  { %344 = vst [vmem:[#allocation7 + $0x198] sm:$0xff] %v280_v43 }
  0x41   :  { %345 = vst [vmem:[#allocation7 + $0x1a0] sm:$0xff] %v281_v47 }
  0x42   :  { %346 = vst [vmem:[#allocation7 + $0x1a8] sm:$0xff] %v282_v51 }
  0x43   :  { %347 = vst [vmem:[#allocation7 + $0x1b0] sm:$0xff] %v283_v54 }
  0x44   :  { %348 = vst [vmem:[#allocation7 + $0x1b8] sm:$0xff] %v284_v57 }
  0x45   :  { %349 = vst [vmem:[#allocation7 + $0x1c0] sm:$0xff] %v285_v60 }
  0x46   :  { %350 = vst [vmem:[#allocation7 + $0x1c8] sm:$0xff] %v286_v62 }
  0x47   :  { %351 = vst [vmem:[#allocation7 + $0x1d0] sm:$0xff] %v287_v1 }
  0x48   :  { %352 = vst [vmem:[#allocation7 + $0x1d8] sm:$0xff] %v288_v4 }
  0x49   :  { %353 = vst [vmem:[#allocation7 + $0x1e0] sm:$0xff] %v289_v6 }
  0x4a   :  { %354 = vst [vmem:[#allocation7 + $0x1e8] sm:$0xff] %v290_v0 }
  0x4b   :  { %355 = vst [vmem:[#allocation7 + $0x1f0] sm:$0xff] %v291_v7 }
  0x4c   :  { %356 = vst [vmem:[#allocation7 + $0x1f8] sm:$0xff] %v292_v8 }
  0x4d   :  { %369 = dma.vmem_to_hbm [thread:$0]  %s362_s1, 8192, %s364_s24, [#allocation6], %s433_s17, %s433_s17, %s434_s18  }
  0x4e   :  { %430 = dma.done.wait [#allocation6], 8192  }
  0x4f   :  { %431 = vsyncadd [#allocation6], 4294959104 }
  0x50   :  { %374 = vsyncpa [#allocation5], 1 }
  0x51   :  { %375 = vsyncpa [#allocation6], 1 }

</bundles_post_ra>
